<compile_context>
chip_gen: v6e
topology: v6e:2x2x1
jax: 0.10.0
libtpu: 0.0.40
codegen_flags: <defaults>
</compile_context>

<pallas_src>
import jax
import jax.numpy as jnp
from jax import lax
from jax.experimental import pallas as pl
from jax.experimental.pallas import tpu as pltpu

_SUB = 256                      # register-blocking chunk (batch columns per sub-step)
_BIG_VMEM = 96 * 1024 * 1024    # physical VMEM >= this => v5e/v6e-class part (128 MiB)


def _round_up(n, m):
    return ((n + m - 1) // m) * m


def _mlp_kernel(x_ref, w1_ref, b1_ref, w2_ref, b2_ref, w3_ref, b3_ref, o_ref):
    """x_ref: (tile_b, 7) natural layout; o_ref: (3, tile_b) feature-major (lane-dense)."""
    w1 = w1_ref[...]        # (25, 7)
    b1 = b1_ref[...]        # (25, 1)
    w2 = w2_ref[...]        # (25, 25)
    b2 = b2_ref[...]        # (25, 1)
    w3 = w3_ref[...]        # (3, 25)
    b3 = b3_ref[...]        # (3, 1)

    tile_b = x_ref.shape[0]
    sub = _SUB if (tile_b % _SUB == 0) else tile_b
    num_sub = tile_b // sub

    def mlp_chunk(xs):
        # xs: (sub, 7) batch-major.  Fold the transpose into the MXU: contract xs's
        # feature dim (last) against W1's feature dim (last) -> (25, sub) feature-major.
        xs = xs.astype(jnp.float32)
        z1 = lax.dot_general(w1, xs, (((1,), (1,)), ((), ())),
                             preferred_element_type=jnp.float32) + b1
        a1 = jnp.maximum(z1, 0.0)
        z2 = jnp.dot(w2, a1, preferred_element_type=jnp.float32) + b2
        a2 = jnp.maximum(z2, 0.0)
        z3 = jnp.dot(w3, a2, preferred_element_type=jnp.float32) + b3
        return z3                                           # (3, sub), lane-dense

    if num_sub == 1:
        o_ref[...] = mlp_chunk(x_ref[...]).astype(o_ref.dtype)
    else:
        # Static (trace-time) loop with static slices: each chunk's activations live in
        # vregs only and are consumed immediately by a lane-dense store.
        for j in range(num_sub):
            lo = j * sub
            o_ref[:, lo:lo + sub] = mlp_chunk(x_ref[lo:lo + sub, :]).astype(o_ref.dtype)


def _chip_limits():
    """Return (max tile columns, vmem_limit_bytes); conservative (v7x-safe) on failure."""
    vmem_cap = None
    try:
        vmem_cap = getattr(pltpu.get_tpu_info(), "vmem_capacity_bytes", None)
    except Exception:
        vmem_cap = None
    if vmem_cap is not None and vmem_cap >= _BIG_VMEM:      # v5e / v6e (128 MiB VMEM)
        return 32768, 48 * 1024 * 1024
    return 16384, 32 * 1024 * 1024                          # v7x (64 MiB) / unknown


def _choose_tile(B, max_tile):
    if B <= 512:
        return B                        # single exact block (legal for any B; no padding)
    # >= 2 balanced tiles so both v7x TensorCores get work; waste <= num_tiles*255 rows.
    n = max(2, pl.cdiv(B, max_tile))
    return min(_round_up(pl.cdiv(B, n), _SUB), max_tile)


def _forward_impl(x, params):
    """x: (B, 7) float; params: PyTorch-style weights (out, in) and biases (out,)."""
    B, in_dim = x.shape
    w1 = params["w1"].astype(jnp.float32)
    b1 = params["b1"].astype(jnp.float32).reshape(-1, 1)
    w2 = params["w2"].astype(jnp.float32)
    b2 = params["b2"].astype(jnp.float32).reshape(-1, 1)
    w3 = params["w3"].astype(jnp.float32)
    b3 = params["b3"].astype(jnp.float32).reshape(-1, 1)
    out_dim = w3.shape[0]

    if B == 0:
        return jnp.zeros((0, out_dim), jnp.float32)

    max_tile, vmem_limit = _chip_limits()
    tile_b = _choose_tile(B, max_tile)
    num_tiles = pl.cdiv(B, tile_b)

    flops = 2 * B * (in_dim * w1.shape[0] + w2.shape[1] * w2.shape[0]
                     + w3.shape[1] * out_dim)
    bytes_accessed = B * (in_dim + out_dim) * 4 + 4 * sum(
        int(p.size) for p in (w1, b1, w2, b2, w3, b3))

    out_fm = pl.pallas_call(
        _mlp_kernel,
        out_shape=jax.ShapeDtypeStruct((out_dim, B), jnp.float32),
        grid=(num_tiles,),
        in_specs=[
            # x: natural-layout (tile_b, 7) batch tile per grid step (double-buffered).
            pl.BlockSpec((tile_b, in_dim), lambda i: (i, 0)),
            # Weights / biases: constant index_map -> fetched once, resident in VMEM.
            pl.BlockSpec(w1.shape, lambda i: (0, 0)),
            pl.BlockSpec(b1.shape, lambda i: (0, 0)),
            pl.BlockSpec(w2.shape, lambda i: (0, 0)),
            pl.BlockSpec(b2.shape, lambda i: (0, 0)),
            pl.BlockSpec(w3.shape, lambda i: (0, 0)),
            pl.BlockSpec(b3.shape, lambda i: (0, 0)),
        ],
        out_specs=pl.BlockSpec((out_dim, tile_b), lambda i: (0, i)),
        compiler_params=pltpu.CompilerParams(
            dimension_semantics=("parallel",),   # batch tiles across TCs on v7x
            vmem_limit_bytes=vmem_limit,
        ),
        cost_estimate=pl.CostEstimate(flops=int(flops), transcendentals=0,
                                      bytes_accessed=int(bytes_accessed)),
    )(x, w1, b1, w2, b2, w3, b3)

    # Only remaining layout fixup: tiny (3, B) -> (B, 3) transpose, fused under jit.
    return out_fm.T


first_net_forward = jax.jit(_forward_impl)


def init_params(key):
    """Deterministic init mirroring nn.Linear: W (out, in), b (out,), bound=1/sqrt(fan_in)."""
    ks = jax.random.split(key, 6)

    def linear(kw, kb, fan_in, fan_out):
        bound = 1.0 / (fan_in ** 0.5)
        w = jax.random.uniform(kw, (fan_out, fan_in), jnp.float32, -bound, bound)
        b = jax.random.uniform(kb, (fan_out,), jnp.float32, -bound, bound)
        return w, b

    w1, b1 = linear(ks[0], ks[1], 7, 25)
    w2, b2 = linear(ks[2], ks[3], 25, 25)
    w3, b3 = linear(ks[4], ks[5], 25, 3)
    return {"w1": w1, "b1": b1, "w2": w2, "b2": b2, "w3": w3, "b3": b3}


def _reference(x, p):
    a1 = jnp.maximum(x @ p["w1"].T + p["b1"], 0.0)
    a2 = jnp.maximum(a1 @ p["w2"].T + p["b2"], 0.0)
    return a2 @ p["w3"].T + p["b3"]


if __name__ == "__main__":
    key = jax.random.PRNGKey(0)
    kp, kx1, kx2 = jax.random.split(key, 3)
    params = init_params(kp)

    # Small check: batch=8 -> single exact block, single sub-chunk.
    x1 = jax.random.normal(kx1, (8, 7), dtype=jnp.float32)
    out1 = jax.block_until_ready(first_net_forward(x1, params))
    ref1 = _reference(x1, params)
    assert out1.shape == (8, 3)
    assert jnp.allclose(out1, ref1, atol=1e-4, rtol=1e-4)

    # Ragged multi-tile check: batch=1300 -> 2 grid steps of 768 columns, 3 register-
    # blocked 256-column sub-chunks each, OOB rows of the last block clipped on writeback.
    x2 = jax.random.normal(kx2, (1300, 7), dtype=jnp.float32)
    out2 = jax.block_until_ready(first_net_forward(x2, params))
    ref2 = _reference(x2, params)
    assert out2.shape == (1300, 3)
    assert jnp.allclose(out2, ref2, atol=1e-4, rtol=1e-4)

    print("KERNEL_OK")
</pallas_src>

<mosaic_0001>
module attributes {stable_mosaic.version = 11 : i64} {
  func.func @_mlp_kernel(%arg0: i32, %arg1: memref<8x7xf32, #tpu.memory_space<vmem>>, %arg2: memref<25x7xf32, #tpu.memory_space<vmem>>, %arg3: memref<25x1xf32, #tpu.memory_space<vmem>>, %arg4: memref<25x25xf32, #tpu.memory_space<vmem>>, %arg5: memref<25x1xf32, #tpu.memory_space<vmem>>, %arg6: memref<3x25xf32, #tpu.memory_space<vmem>>, %arg7: memref<3x1xf32, #tpu.memory_space<vmem>>, %arg8: memref<3x8xf32, #tpu.memory_space<vmem>>) attributes {dimension_semantics = [#tpu.dimension_semantics<parallel>], iteration_bounds = array<i64: 1>, scalar_prefetch = 0 : i64, scratch_operands = 0 : i64, tpu.core_type = #tpu.core_type<tc>, window_params = [{transform_indices = @transform_0, window_bounds = array<i64: 8, 7>}, {pipeline_mode = #tpu.pipeline_mode<synchronous>, transform_indices = @transform_1, window_bounds = array<i64: 25, 7>}, {pipeline_mode = #tpu.pipeline_mode<synchronous>, transform_indices = @transform_2, window_bounds = array<i64: 25, 1>}, {pipeline_mode = #tpu.pipeline_mode<synchronous>, transform_indices = @transform_3, window_bounds = array<i64: 25, 25>}, {pipeline_mode = #tpu.pipeline_mode<synchronous>, transform_indices = @transform_4, window_bounds = array<i64: 25, 1>}, {pipeline_mode = #tpu.pipeline_mode<synchronous>, transform_indices = @transform_5, window_bounds = array<i64: 3, 25>}, {pipeline_mode = #tpu.pipeline_mode<synchronous>, transform_indices = @transform_6, window_bounds = array<i64: 3, 1>}, {transform_indices = @transform_7, window_bounds = array<i64: 3, 8>}]} {
    %c0 = arith.constant 0 : index
    %c0_0 = arith.constant 0 : index
    %0 = vector.load %arg2[%c0, %c0_0] : memref<25x7xf32, #tpu.memory_space<vmem>>, vector<25x7xf32>
    %c0_1 = arith.constant 0 : index
    %c0_2 = arith.constant 0 : index
    %1 = vector.load %arg3[%c0_1, %c0_2] : memref<25x1xf32, #tpu.memory_space<vmem>>, vector<25x1xf32>
    %c0_3 = arith.constant 0 : index
    %c0_4 = arith.constant 0 : index
    %2 = vector.load %arg4[%c0_3, %c0_4] : memref<25x25xf32, #tpu.memory_space<vmem>>, vector<25x25xf32>
    %c0_5 = arith.constant 0 : index
    %c0_6 = arith.constant 0 : index
    %3 = vector.load %arg5[%c0_5, %c0_6] : memref<25x1xf32, #tpu.memory_space<vmem>>, vector<25x1xf32>
    %c0_7 = arith.constant 0 : index
    %c0_8 = arith.constant 0 : index
    %4 = vector.load %arg6[%c0_7, %c0_8] : memref<3x25xf32, #tpu.memory_space<vmem>>, vector<3x25xf32>
    %c0_9 = arith.constant 0 : index
    %c0_10 = arith.constant 0 : index
    %5 = vector.load %arg7[%c0_9, %c0_10] : memref<3x1xf32, #tpu.memory_space<vmem>>, vector<3x1xf32>
    %c0_11 = arith.constant 0 : index
    %c0_12 = arith.constant 0 : index
    %6 = vector.load %arg1[%c0_11, %c0_12] : memref<8x7xf32, #tpu.memory_space<vmem>>, vector<8x7xf32>
    %cst = arith.constant dense<0.000000e+00> : vector<25x8xf32>
    %7 = tpu.matmul %0, %6, %cst {dimension_numbers = #tpu.dot_dimension_numbers<[1], [1], [0], [0], [0, 0, 1, 0], [], []>} : vector<25x7xf32>, vector<8x7xf32>, vector<25x8xf32> -> vector<25x8xf32>
    %8 = vector.broadcast %1 : vector<25x1xf32> to vector<25x8xf32>
    %9 = arith.addf %7, %8 : vector<25x8xf32>
    %cst_13 = arith.constant 0.000000e+00 : f32
    %10 = vector.broadcast %cst_13 : f32 to vector<25x8xf32>
    %11 = arith.maximumf %9, %10 : vector<25x8xf32>
    %cst_14 = arith.constant dense<0.000000e+00> : vector<25x8xf32>
    %12 = tpu.matmul %2, %11, %cst_14 {dimension_numbers = #tpu.dot_dimension_numbers<[1], [0], [0], [1], [0, 0, 1, 1], [], []>} : vector<25x25xf32>, vector<25x8xf32>, vector<25x8xf32> -> vector<25x8xf32>
    %13 = vector.broadcast %3 : vector<25x1xf32> to vector<25x8xf32>
    %14 = arith.addf %12, %13 : vector<25x8xf32>
    %cst_15 = arith.constant 0.000000e+00 : f32
    %15 = vector.broadcast %cst_15 : f32 to vector<25x8xf32>
    %16 = arith.maximumf %14, %15 : vector<25x8xf32>
    %cst_16 = arith.constant dense<0.000000e+00> : vector<3x8xf32>
    %17 = tpu.matmul %4, %16, %cst_16 {dimension_numbers = #tpu.dot_dimension_numbers<[1], [0], [0], [1], [0, 0, 1, 1], [], []>} : vector<3x25xf32>, vector<25x8xf32>, vector<3x8xf32> -> vector<3x8xf32>
    %18 = vector.broadcast %5 : vector<3x1xf32> to vector<3x8xf32>
    %19 = arith.addf %17, %18 : vector<3x8xf32>
    %c0_17 = arith.constant 0 : index
    %c0_18 = arith.constant 0 : index
    %20 = vector.load %arg8[%c0_17, %c0_18] : memref<3x8xf32, #tpu.memory_space<vmem>>, vector<3x8xf32>
    tpu.vector_store %arg8[%c0_17, %c0_18], %19 {strides = array<i32>} : memref<3x8xf32, #tpu.memory_space<vmem>>, vector<3x8xf32>,
    return
  }
  func.func @transform_0(%arg0: i32) -> (i32, i32) {
    %c0_i32 = arith.constant 0 : i32
    %c0_i32_0 = arith.constant 0 : i32
    return %arg0, %c0_i32 : i32, i32
  }
  func.func @transform_1(%arg0: i32) -> (i32, i32) {
    %c0_i32 = arith.constant 0 : i32
    %c0_i32_0 = arith.constant 0 : i32
    %c0_i32_1 = arith.constant 0 : i32
    return %c0_i32, %c0_i32_0 : i32, i32
  }
  func.func @transform_2(%arg0: i32) -> (i32, i32) {
    %c0_i32 = arith.constant 0 : i32
    %c0_i32_0 = arith.constant 0 : i32
    %c0_i32_1 = arith.constant 0 : i32
    return %c0_i32, %c0_i32_0 : i32, i32
  }
  func.func @transform_3(%arg0: i32) -> (i32, i32) {
    %c0_i32 = arith.constant 0 : i32
    %c0_i32_0 = arith.constant 0 : i32
    %c0_i32_1 = arith.constant 0 : i32
    return %c0_i32, %c0_i32_0 : i32, i32
  }
  func.func @transform_4(%arg0: i32) -> (i32, i32) {
    %c0_i32 = arith.constant 0 : i32
    %c0_i32_0 = arith.constant 0 : i32
    %c0_i32_1 = arith.constant 0 : i32
    return %c0_i32, %c0_i32_0 : i32, i32
  }
  func.func @transform_5(%arg0: i32) -> (i32, i32) {
    %c0_i32 = arith.constant 0 : i32
    %c0_i32_0 = arith.constant 0 : i32
    %c0_i32_1 = arith.constant 0 : i32
    return %c0_i32, %c0_i32_0 : i32, i32
  }
  func.func @transform_6(%arg0: i32) -> (i32, i32) {
    %c0_i32 = arith.constant 0 : i32
    %c0_i32_0 = arith.constant 0 : i32
    %c0_i32_1 = arith.constant 0 : i32
    return %c0_i32, %c0_i32_0 : i32, i32
  }
  func.func @transform_7(%arg0: i32) -> (i32, i32) {
    %c0_i32 = arith.constant 0 : i32
    %c0_i32_0 = arith.constant 0 : i32
    return %c0_i32, %arg0 : i32, i32
  }
}

</mosaic_0001>

<bundles_post_ra>
// kernel: _forward_impl.1
= control target key start
LH: loop header
LB: loop body
LE: loop exit
PB: predicated region body
PF: predicated region fallthrough
CT: control target
= control target key end

     0   :  { %vm66_vm0 = vcmask 56320   ;;  %v485_v4 = vmov 0   ;;  %s603_s0 = inlined_call_operand.vmem [shape: f32[8,7], index: 0, kind: input, shape index: {}]   ;;  %s604_s1 = inlined_call_operand.vmem [shape: f32[25,7], index: 1, kind: input, shape index: {}]   ;;  %s605_s2 = inlined_call_operand.vmem [shape: f32[25,1], index: 2, kind: input, shape index: {}]   ;;  %s606_s3 = inlined_call_operand.vmem [shape: f32[25,25], index: 3, kind: input, shape index: {}]   ;;  %s607_s4 = inlined_call_operand.vmem [shape: f32[25,1], index: 4, kind: input, shape index: {}]   ;;  %s608_s5 = inlined_call_operand.vmem [shape: f32[3,25], index: 5, kind: input, shape index: {}]   ;;  %s609_s6 = inlined_call_operand.vmem [shape: f32[3,1], index: 6, kind: input, shape index: {}]   ;;  %s610_s7 = inlined_call_operand.hbm [shape: f32[3,8], index: 7, kind: output, shape index: {}]  }
   0x1   :  { %v45_v0 = vld [vmem:[%s603_s0] sm:$0xff]  ;;  %v34_v2 = vld [vmem:[%s605_s2 + $0x18] sm:$0x1]  ;;  %v28_v3 = vld [vmem:[%s604_s1 + $0x8] sm:$0xff]  ;;  %461 = vset.pattern.permute.xlu0 %v485_v4  ;;  %462 = vset.pattern.permute.xlu1 %v485_v4 }
   0x2   :  { %v27_v1 = vld [vmem:[%s604_s1] sm:$0xff]  ;;  %424 = vmatprep.subr.msk.mxu0 %vm66_vm0, %v45_v0  ;;  %v32_v5 = vld [vmem:[%s605_s2 + $0x8] sm:$0xff]  ;;  %v29_v6 = vld [vmem:[%s604_s1 + $0x10] sm:$0xff]  ;;  %63 = vperm.xlu0 %461, %v34_v2  }
   0x3   :  { %426 = vmatprep.mubr.msk.f32.mxu0 %vm66_vm0, %v27_v1  ;;  %425 = vmatpush3.xpose.msk.msra.mxu0 %vm66_vm0, %v45_v0  ;;  %v33_v7 = vld [vmem:[%s605_s2 + $0x10] sm:$0xff] }
   0x4   :  { %53 = vperm.xlu1 %462, %v32_v5  }
   0x5   :  { %12 = vsyncpa [#allocation3], 0  ;;  %v31_v8 = vld [vmem:[%s605_s2] sm:$0xff]  ;;  %v30_v9 = vld [vmem:[%s604_s1 + $0x18] sm:$0x1]  ;;  %vm191_vm1 = vcmask 203776  }
   0x6   :  { %427 = vmatmul.mubr.msk.f32.vlgmr.msra.gmra.mxu0 %vm66_vm0, %v28_v3  ;;  %58 = vperm.xlu0 %461, %v33_v7   ;;  %v42_v10 = vld [vmem:[%s607_s4 + $0x18] sm:$0x1]  ;;  %v41_v11 = vld [vmem:[%s607_s4 + $0x10] sm:$0xff]  ;;  %v40_v12 = vld [vmem:[%s607_s4 + $0x8] sm:$0xff]  ;;  %vm204_vm2 = vcmask 1040384   ;;  %v486_v35 = vmov 0.0  }
   0x7   :  { %429 = vmatprep.mubr.msk.f32.mxu0 %vm66_vm0, %v29_v6  ;;  %v39_v13 = vld [vmem:[%s607_s4] sm:$0xff]  ;;  %v36_v32 = vld [vmem:[%s606_s3 + $0x8] sm:$0xff]  ;;  %v37_v33 = vld [vmem:[%s606_s3 + $0x10] sm:$0xff]  ;;  %446 = vmatprep.subr.mxu0 %v486_v35  ;;  %vm487_vm3 = vmmov 0   ;;  %s488_s9 = smov [#allocation2]   ;;  %vm378_vm4 = vcmask 59392  }
   0x8   :  { %48 = vperm.xlu1 %462, %v31_v8   ;;  %v44_v14 = vld [vmem:[%s609_s6] sm:$0x7]  ;;  %v38_v34 = vld [vmem:[%s606_s3 + $0x18] sm:$0x1]  ;;  %s386_s10 = sshll.u32 %s488_s9, 4  ;;  %s387_s10 = int_to_ptr.vmem [resolvable:$true] %s386_s10 }
   0x9   :  { %v35_v15 = vld [vmem:[%s606_s3] sm:$0xff]  ;;  %s463_s11 = scalar_lea.vmem %s387_s10, 64  ;;  %p468_p1 = scmp.lt.s32.totalorder %s387_s10, %s387_s10 }
   0xa   :  { %430 = vmatmul.mubr.msk.f32.gmra.mxu0 %vm66_vm0, %v30_v9  ;;  %188 = vperm.xlu0 %461, %v42_v10   ;;  %v43_v52 = vld [vmem:[%s608_s5] sm:$0x7]  ;;  %p464_p0 = scmp.ne.s32.totalorder %s387_s10, %s463_s11  ;;  %p469_p2 = scmp.lt.s32.totalorder %s463_s11, %s463_s11 }
   0xb   :  { %440 = vmatprep.mubr.msk.f32.mxu1 %vm191_vm1, %v35_v15  ;;  %454 = vmatprep.mubr.msk.f32.mxu0 %vm487_vm3, %v486_v35 }
   0xc   :  { %183 = vperm.xlu1 %462, %v41_v11   ;;  %p470_p3 = por %p469_p2, %p468_p1 }
   0xe   :  { %178 = vperm.xlu0 %461, %v40_v12   ;;  %p471_p4 = pnand %p470_p3, %p464_p0 }
  0x10   :  { %173 = vperm.xlu1 %462, %v39_v13  }
  0x12   :  { %299 = vperm.xlu0 %461, %v44_v14  }
  0x7d   :  { %v64_v16 = vpop.permute.xlu0 %63 }
  0x7f   :  { %v54_v18 = vpop.permute.xlu1 %53 }
  0x81   :  { %v59_v22 = vpop.permute.xlu0 %58 }
  0x83   :  { %v49_v27 = vpop.permute.xlu1 %48 }
  0x85   :  { %v189_v36 = vpop.permute.xlu0 %188 }
  0x87   :  { %v184_v38 = vpop.permute.xlu1 %183 }
  0x89   :  { %v179_v42 = vpop.permute.xlu0 %178 }
  0x8b   :  { %v174_v47 = vpop.permute.xlu1 %173 }
  0x8d   :  { %v300_v53 = vpop.permute.xlu0 %299 }
  0xc6   :  { %v428_v17 = vpop.f32.mrf.mxu0 }
  0xc7   :  { %v154_v24 = vadd.f32 %v428_v17, %v54_v18 }
  0xc8   :  { %v148_v19 = vpop.f32.mrf.mxu0 }
  0xc9   :  { %v149_v28 = vadd.f32 %v148_v19, %v49_v27  ;;  %v168_v30 = vmax.f32 %v154_v24, 0.0 }
  0xca   :  { %v431_v20 = vpop.f32.mrf.mxu0 }
  0xcb   :  { %v164_v21 = vadd.f32 %v431_v20, %v64_v16  ;;  %v167_v31 = vmax.f32 %v149_v28, 0.0 }
  0xcc   :  { %v158_v23 = vpop.f32.mrf.mxu0 }
  0xcd   :  { %v170_v25 = vmax.f32 %v164_v21, 0.0  ;;  %v159_v26 = vadd.f32 %v158_v23, %v59_v22 }
  0xcf   :  { %v169_v29 = vmax.f32 %v159_v26, 0.0  ;;  %432 = vmatprep.subr.msk.mxu1 %vm204_vm2, %v170_v25 }
  0xd0   :  { %433 = vmatpush3.msk.msra.mxu1 %vm204_vm2, %v170_v25 }
  0xd1   :  { %434 = vmatprep.subr.mxu1 %v169_v29 }
  0xd2   :  { %435 = vmatpush3.msra.mxu1 %v169_v29 }
  0xd3   :  { %436 = vmatprep.subr.mxu1 %v168_v30 }
  0xd4   :  { %437 = vmatpush3.msra.mxu1 %v168_v30 }
  0xd5   :  { %438 = vmatprep.subr.mxu1 %v167_v31 }
  0xd6   :  { %439 = vmatpush3.msra.mxu1 %v167_v31 }
  0xd7   :  { %441 = vmatmul.mubr.msk.f32.vlgmr.msra.gmra.mxu1 %vm191_vm1, %v36_v32 }
  0xd8   :  { %443 = vmatprep.mubr.msk.f32.mxu1 %vm191_vm1, %v37_v33 }
  0xdb   :  { %444 = vmatmul.mubr.msk.f32.gmra.mxu1 %vm191_vm1, %v38_v34 }
 0x197   :  { %v442_v37 = vpop.f32.mrf.mxu1 }
 0x198   :  { %v280_v44 = vadd.f32 %v442_v37, %v179_v42 }
 0x199   :  { %v274_v39 = vpop.f32.mrf.mxu1 }
 0x19a   :  { %v275_v48 = vadd.f32 %v274_v39, %v174_v47  ;;  %v294_v50 = vmax.f32 %v280_v44, 0.0 }
 0x19b   :  { %v445_v40 = vpop.f32.mrf.mxu1 }
 0x19c   :  { %v290_v41 = vadd.f32 %v445_v40, %v189_v36  ;;  %v293_v51 = vmax.f32 %v275_v48, 0.0 }
 0x19d   :  { %v284_v43 = vpop.f32.mrf.mxu1 }
 0x19e   :  { %v296_v45 = vmax.f32 %v290_v41, 0.0  ;;  %v285_v46 = vadd.f32 %v284_v43, %v184_v38 }
 0x1a0   :  { %v295_v49 = vmax.f32 %v285_v46, 0.0  ;;  %447 = vmatpush3.msk.msra.mxu0 %vm204_vm2, %v296_v45 }
 0x1a1   :  { %448 = vmatprep.subr.mxu0 %v486_v35 }
 0x1a2   :  { %449 = vmatpush3.msra.mxu0 %v295_v49 }
 0x1a3   :  { %450 = vmatprep.subr.mxu0 %v486_v35 }
 0x1a4   :  { %451 = vmatpush3.msra.mxu0 %v294_v50 }
 0x1a5   :  { %452 = vmatprep.subr.mxu0 %v486_v35 }
 0x1a6   :  { %453 = vmatpush3.msra.mxu0 %v293_v51 }
 0x1a7   :  { %455 = vmatmul.mubr.msk.f32.vlgmr.msra.gmra.mxu0 %vm191_vm1, %v43_v52 }
 0x267   :  { %v374_v54 = vpop.f32.mrf.mxu0 }
 0x268   :  { %v375_v55 = vadd.f32 %v374_v54, %v300_v53 }
 0x269   :  { %v456_v56 = vpop.f32.mrf.mxu0 }
 0x26a   :  { %379 = vst.msk [vmem:[#allocation2] sm:$0x7] %vm378_vm4, %v375_v55 }
 0x26b   :  { %474 = shalt.err (!%p471_p4)
}
 0x26c   :  { %389 = dma.vmem_to_hbm [thread:$0]  %s387_s10, 64, %s610_s7, [#allocation3]  }
 0x26d   :  { %483 = dma.done.wait [#allocation3], 64  }
 0x26e   :  { %484 = vsyncadd [#allocation3], 4294967232 }
 0x26f   :  { %393 = vsyncpa [#allocation3], 1 }

</bundles_post_ra>
